<compile_context>
chip_gen: v5e
topology: v5e:2x2
jax: 0.10.0
libtpu: 0.0.40
codegen_flags: <defaults>
</compile_context>

<pallas_src>
import functools

import jax
import jax.numpy as jnp
from jax.experimental import pallas as pl
from jax.experimental.pallas import tpu as pltpu

K = 7
PAD = 3
KK = K * K
MPAD = 64  # 49 taps padded to an MXU-friendly row count


def _attention_kernel(wt_ref, mask_ref, x_ref, o_ref, xpad_ref, s_ref, *,
                      W, HW, F, G, C, bB):
    """Fused 7x7 single-output-channel conv + sigmoid + broadcast multiply.

    wt_ref  : VMEM (MPAD, Cp) transposed conv weights, wt[t, c] = w[c, kh, kw]
    mask_ref: VMEM (K, HW) f32 horizontal-wrap mask per kernel column offset
    x_ref   : VMEM (bB, C, HW) lane-dense flattened input block
    o_ref   : VMEM (bB, C, HW) output block
    xpad_ref: VMEM (Cp, L) scratch: per-channel zero-haloed flat image
    s_ref   : VMEM (MPAD, L) f32 scratch: per-tap channel-reduced partial sums
    """
    Cp, L = xpad_ref.shape

    # Zero only the halo strips; the image region [F, F+HW) is fully
    # overwritten by the bulk staging copy below.
    xpad_ref[:, :F] = jnp.zeros((Cp, F), xpad_ref.dtype)
    xpad_ref[:, F + HW:] = jnp.zeros((Cp, L - F - HW), xpad_ref.dtype)
    if Cp > C:
        # Channel-padding rows are never staged: keep them zero so the zero
        # weight columns can never pick up NaN/Inf garbage via 0 * garbage.
        xpad_ref[C:, F:F + HW] = jnp.zeros((Cp - C, HW), xpad_ref.dtype)

    def one_image(b):
        # Stage this image with ONE dense slab copy:
        #   xpad[c, F + p] = x[b, c, p]
        # so tap (kh, kw) of output pixel p reads xpad[c, p + G + kh*W + kw]
        # (G = F - PAD*W - PAD).  Vertical out-of-range taps land in the zero
        # halo; horizontal out-of-range taps are killed by mask_ref.
        xpad_ref[:C, F:F + HW] = x_ref[b]

        # MXU channel contraction for all 49 taps at once:
        #   S[t, q] = sum_c wt[t, c] * xpad[c, q]   (f32 accumulation).
        s_ref[...] = jnp.dot(wt_ref[...], xpad_ref[...],
                             preferred_element_type=jnp.float32)

        # 49 shifted adds; taps sharing a kernel column share one wrap mask.
        acc = jnp.zeros((1, HW), jnp.float32)
        for kw in range(K):
            base = G + kw
            col = s_ref[kw:kw + 1, base:base + HW]
            for kh in range(1, K):
                t = kh * K + kw
                off = base + kh * W
                col = col + s_ref[t:t + 1, off:off + HW]
            if kw != PAD:          # kw == PAD mask is all-ones
                col = col * mask_ref[kw:kw + 1, :]
            acc = acc + col

        # Epilogue in the input dtype: cast att once; no (C, HW) f32 temporary.
        att = jax.nn.sigmoid(acc).astype(o_ref.dtype)
        o_ref[b] = x_ref[b] * att

    if bB == 1:
        one_image(0)
    else:
        jax.lax.fori_loop(0, bB, lambda b, carry: (one_image(b), carry)[1], 0)


def _pick_batch_block(B, C, HW, itemsize):
    """Images per grid step: amortize ~0.35us/step overhead, keep >=2 steps."""
    per_img = 2 * C * HW * itemsize                 # input + output bytes
    target = 8 << 20                                # ~8 MiB of I/O per step
    bb = max(1, min(B, target // max(per_img, 1)))
    if B >= 2:
        bb = min(bb, max(1, B // 2))                # >=2 steps for megacore
    while B % bb:
        bb -= 1
    return bb


def spatial_attention(x, weight):
    """x: (B, C, H, W), weight: (1, C, 7, 7) -> x * sigmoid(conv7x7(x))."""
    B, C, H, W = x.shape
    assert weight.shape == (1, C, K, K)
    HW = H * W
    itemsize = x.dtype.itemsize

    # Lane-dense flat layout (free reshape, no HBM copy).
    x_flat = x.reshape(B, C, HW)

    # Transposed, padded weight table for the MXU: wt[t, c] = w[0, c, kh, kw]
    # with t = kh*7 + kw; rows 49..63 and channel-padding columns are zero.
    Cp = max(8, -(-C // 8) * 8)
    wt = jnp.transpose(weight.reshape(C, KK).astype(jnp.float32), (1, 0))
    wt = jnp.pad(wt, ((0, MPAD - KK), (0, Cp - C))).astype(x.dtype)

    # Horizontal wrap mask (exact integer math): mask[kw, p] == 1 iff column
    # (p % W) + (kw - PAD) stays inside [0, W).
    colw = jnp.arange(HW, dtype=jnp.int32) % W
    dw = jnp.arange(K, dtype=jnp.int32) - PAD
    shifted = colw[None, :] + dw[:, None]
    mask = jnp.logical_and(shifted >= 0, shifted < W).astype(jnp.float32)

    bB = _pick_batch_block(B, C, HW, itemsize)
    grid = (B // bB,)

    # Flat scratch row: lane-aligned front halo + image + back halo.
    F = -(-(PAD * W + PAD) // 128) * 128
    L = -(-(F + HW + PAD * W + PAD) // 128) * 128
    G = F - (PAD * W + PAD)

    kernel = functools.partial(_attention_kernel, W=W, HW=HW, F=F, G=G,
                               C=C, bB=bB)

    io_block = bB * C * HW * itemsize
    vmem_est = (4 * io_block                       # double-buffered in + out
                + Cp * L * itemsize                # xpad scratch
                + MPAD * L * 4                     # tap-matmul scratch
                + MPAD * Cp * itemsize + K * HW * 4
                + (4 << 20))                       # headroom
    vmem_limit = int(min(64 << 20, max(vmem_est, 32 << 20)))

    out = pl.pallas_call(
        kernel,
        out_shape=jax.ShapeDtypeStruct((B, C, HW), x.dtype),
        grid_spec=pltpu.PrefetchScalarGridSpec(
            num_scalar_prefetch=0,
            grid=grid,
            in_specs=[
                pl.BlockSpec((MPAD, Cp), lambda i: (0, 0)),      # weights
                pl.BlockSpec((K, HW), lambda i: (0, 0)),         # wrap mask
                pl.BlockSpec((bB, C, HW), lambda i: (i, 0, 0)),  # x
            ],
            out_specs=pl.BlockSpec((bB, C, HW), lambda i: (i, 0, 0)),
            scratch_shapes=[
                pltpu.VMEM((Cp, L), x.dtype),        # zero-haloed flat image
                pltpu.VMEM((MPAD, L), jnp.float32),  # per-tap partial sums
            ],
        ),
        compiler_params=pltpu.CompilerParams(
            dimension_semantics=("parallel",),
            vmem_limit_bytes=vmem_limit),
    )(wt, mask, x_flat)

    return out.reshape(B, C, H, W)


def _reference(x, weight):
    att = jax.lax.conv_general_dilated(
        x, weight, window_strides=(1, 1),
        padding=((PAD, PAD), (PAD, PAD)),
        dimension_numbers=("NCHW", "OIHW", "NCHW"),
        precision=jax.lax.Precision.HIGHEST)
    return x * jax.nn.sigmoid(att)


if __name__ == "__main__":
    key = jax.random.PRNGKey(0)
    kx, kw_key = jax.random.split(key)

    B, C, H, W = 2, 4, 16, 16
    x = jax.random.normal(kx, (B, C, H, W), dtype=jnp.float32)
    # Deterministic weight init, shape matches nn.Conv2d(C, 1, 7, bias=False).
    fan_in = C * K * K
    bound = 1.0 / (fan_in ** 0.5)
    weight = jax.random.uniform(kw_key, (1, C, K, K), jnp.float32, -bound, bound)

    out = jax.block_until_ready(jax.jit(spatial_attention)(x, weight))

    ref = _reference(x, weight)
    # Tolerance allows for MXU f32 rounding vs the HIGHEST-precision reference.
    assert jnp.allclose(out, ref, atol=1e-3, rtol=1e-3), (
        "Pallas spatial attention mismatch vs reference")

    print("KERNEL_OK")
</pallas_src>

<mosaic_0001>
module attributes {stable_mosaic.version = 11 : i64} {
  func.func @_attention_kernel(%arg0: i32, %arg1: memref<64x8xf32, #tpu.memory_space<vmem>>, %arg2: memref<7x256xf32, #tpu.memory_space<vmem>>, %arg3: memref<1x4x256xf32, #tpu.memory_space<vmem>>, %arg4: memref<1x4x256xf32, #tpu.memory_space<vmem>>, %arg5: memref<8x512xf32, #tpu.memory_space<vmem>>, %arg6: memref<64x512xf32, #tpu.memory_space<vmem>>) attributes {dimension_semantics = [#tpu.dimension_semantics<parallel>], iteration_bounds = array<i64: 2>, scalar_prefetch = 0 : i64, scratch_operands = 2 : i64, tpu.core_type = #tpu.core_type<tc>, window_params = [{pipeline_mode = #tpu.pipeline_mode<synchronous>, transform_indices = @transform_0, window_bounds = array<i64: 64, 8>}, {pipeline_mode = #tpu.pipeline_mode<synchronous>, transform_indices = @transform_1, window_bounds = array<i64: 7, 256>}, {transform_indices = @transform_2, window_bounds = array<i64: 1, 4, 256>}, {transform_indices = @transform_3, window_bounds = array<i64: 1, 4, 256>}]} {
    %cst = arith.constant 0.000000e+00 : f32
    %0 = vector.broadcast %cst : f32 to vector<8x128xf32>
    %c0 = arith.constant 0 : index
    %c0_0 = arith.constant 0 : index
    %1 = vector.load %arg5[%c0, %c0_0] : memref<8x512xf32, #tpu.memory_space<vmem>>, vector<8x128xf32>
    tpu.vector_store %arg5[%c0, %c0_0], %0 {strides = array<i32>} : memref<8x512xf32, #tpu.memory_space<vmem>>, vector<8x128xf32>,
    %cst_1 = arith.constant 0.000000e+00 : f32
    %2 = vector.broadcast %cst_1 : f32 to vector<8x128xf32>
    %c0_2 = arith.constant 0 : index
    %c384 = arith.constant 384 : index
    %3 = vector.load %arg5[%c0_2, %c384] : memref<8x512xf32, #tpu.memory_space<vmem>>, vector<8x128xf32>
    tpu.vector_store %arg5[%c0_2, %c384], %2 {strides = array<i32>} : memref<8x512xf32, #tpu.memory_space<vmem>>, vector<8x128xf32>,
    %cst_3 = arith.constant 0.000000e+00 : f32
    %4 = vector.broadcast %cst_3 : f32 to vector<4x256xf32>
    %c4 = arith.constant 4 : index
    %c128 = arith.constant 128 : index
    %5 = vector.load %arg5[%c4, %c128] : memref<8x512xf32, #tpu.memory_space<vmem>>, vector<4x256xf32>
    tpu.vector_store %arg5[%c4, %c128], %4 {strides = array<i32>} : memref<8x512xf32, #tpu.memory_space<vmem>>, vector<4x256xf32>,
    %c0_4 = arith.constant 0 : index
    %c0_5 = arith.constant 0 : index
    %c0_6 = arith.constant 0 : index
    %6 = vector.load %arg3[%c0_4, %c0_5, %c0_6] : memref<1x4x256xf32, #tpu.memory_space<vmem>>, vector<1x4x256xf32>
    %7 = vector.shape_cast %6 : vector<1x4x256xf32> to vector<4x256xf32>
    %c0_7 = arith.constant 0 : index
    %c128_8 = arith.constant 128 : index
    %8 = vector.load %arg5[%c0_7, %c128_8] : memref<8x512xf32, #tpu.memory_space<vmem>>, vector<4x256xf32>
    tpu.vector_store %arg5[%c0_7, %c128_8], %7 {strides = array<i32>} : memref<8x512xf32, #tpu.memory_space<vmem>>, vector<4x256xf32>,
    %c0_9 = arith.constant 0 : index
    %c0_10 = arith.constant 0 : index
    %9 = vector.load %arg1[%c0_9, %c0_10] : memref<64x8xf32, #tpu.memory_space<vmem>>, vector<64x8xf32>
    %c0_11 = arith.constant 0 : index
    %c0_12 = arith.constant 0 : index
    %10 = vector.load %arg5[%c0_11, %c0_12] : memref<8x512xf32, #tpu.memory_space<vmem>>, vector<8x512xf32>
    %cst_13 = arith.constant dense<0.000000e+00> : vector<64x512xf32>
    %11 = tpu.matmul %9, %10, %cst_13 {dimension_numbers = #tpu.dot_dimension_numbers<[1], [0], [0], [1], [0, 0, 1, 1], [], []>} : vector<64x8xf32>, vector<8x512xf32>, vector<64x512xf32> -> vector<64x512xf32>
    %c0_14 = arith.constant 0 : index
    %c0_15 = arith.constant 0 : index
    %12 = vector.load %arg6[%c0_14, %c0_15] : memref<64x512xf32, #tpu.memory_space<vmem>>, vector<64x512xf32>
    tpu.vector_store %arg6[%c0_14, %c0_15], %11 {strides = array<i32>} : memref<64x512xf32, #tpu.memory_space<vmem>>, vector<64x512xf32>,
    %cst_16 = arith.constant 0.000000e+00 : f32
    %13 = vector.broadcast %cst_16 : f32 to vector<1x256xf32>
    %c0_17 = arith.constant 0 : index
    %c77 = arith.constant 77 : index
    %14 = vector.load %arg6[%c0_17, %c77] : memref<64x512xf32, #tpu.memory_space<vmem>>, vector<1x256xf32>
    %c7 = arith.constant 7 : index
    %c93 = arith.constant 93 : index
    %15 = vector.load %arg6[%c7, %c93] : memref<64x512xf32, #tpu.memory_space<vmem>>, vector<1x256xf32>
    %16 = arith.addf %14, %15 : vector<1x256xf32>
    %c14 = arith.constant 14 : index
    %c109 = arith.constant 109 : index
    %17 = vector.load %arg6[%c14, %c109] : memref<64x512xf32, #tpu.memory_space<vmem>>, vector<1x256xf32>
    %18 = arith.addf %16, %17 : vector<1x256xf32>
    %c21 = arith.constant 21 : index
    %c125 = arith.constant 125 : index
    %19 = vector.load %arg6[%c21, %c125] : memref<64x512xf32, #tpu.memory_space<vmem>>, vector<1x256xf32>
    %20 = arith.addf %18, %19 : vector<1x256xf32>
    %c28 = arith.constant 28 : index
    %c141 = arith.constant 141 : index
    %21 = vector.load %arg6[%c28, %c141] : memref<64x512xf32, #tpu.memory_space<vmem>>, vector<1x256xf32>
    %22 = arith.addf %20, %21 : vector<1x256xf32>
    %c35 = arith.constant 35 : index
    %c157 = arith.constant 157 : index
    %23 = vector.load %arg6[%c35, %c157] : memref<64x512xf32, #tpu.memory_space<vmem>>, vector<1x256xf32>
    %24 = arith.addf %22, %23 : vector<1x256xf32>
    %c42 = arith.constant 42 : index
    %c173 = arith.constant 173 : index
    %25 = vector.load %arg6[%c42, %c173] : memref<64x512xf32, #tpu.memory_space<vmem>>, vector<1x256xf32>
    %26 = arith.addf %24, %25 : vector<1x256xf32>
    %c0_18 = arith.constant 0 : index
    %c0_19 = arith.constant 0 : index
    %27 = vector.load %arg2[%c0_18, %c0_19] : memref<7x256xf32, #tpu.memory_space<vmem>>, vector<1x256xf32>
    %28 = arith.mulf %26, %27 : vector<1x256xf32>
    %29 = arith.addf %13, %28 : vector<1x256xf32>
    %c1 = arith.constant 1 : index
    %c78 = arith.constant 78 : index
    %30 = vector.load %arg6[%c1, %c78] : memref<64x512xf32, #tpu.memory_space<vmem>>, vector<1x256xf32>
    %c8 = arith.constant 8 : index
    %c94 = arith.constant 94 : index
    %31 = vector.load %arg6[%c8, %c94] : memref<64x512xf32, #tpu.memory_space<vmem>>, vector<1x256xf32>
    %32 = arith.addf %30, %31 : vector<1x256xf32>
    %c15 = arith.constant 15 : index
    %c110 = arith.constant 110 : index
    %33 = vector.load %arg6[%c15, %c110] : memref<64x512xf32, #tpu.memory_space<vmem>>, vector<1x256xf32>
    %34 = arith.addf %32, %33 : vector<1x256xf32>
    %c22 = arith.constant 22 : index
    %c126 = arith.constant 126 : index
    %35 = vector.load %arg6[%c22, %c126] : memref<64x512xf32, #tpu.memory_space<vmem>>, vector<1x256xf32>
    %36 = arith.addf %34, %35 : vector<1x256xf32>
    %c29 = arith.constant 29 : index
    %c142 = arith.constant 142 : index
    %37 = vector.load %arg6[%c29, %c142] : memref<64x512xf32, #tpu.memory_space<vmem>>, vector<1x256xf32>
    %38 = arith.addf %36, %37 : vector<1x256xf32>
    %c36 = arith.constant 36 : index
    %c158 = arith.constant 158 : index
    %39 = vector.load %arg6[%c36, %c158] : memref<64x512xf32, #tpu.memory_space<vmem>>, vector<1x256xf32>
    %40 = arith.addf %38, %39 : vector<1x256xf32>
    %c43 = arith.constant 43 : index
    %c174 = arith.constant 174 : index
    %41 = vector.load %arg6[%c43, %c174] : memref<64x512xf32, #tpu.memory_space<vmem>>, vector<1x256xf32>
    %42 = arith.addf %40, %41 : vector<1x256xf32>
    %c1_20 = arith.constant 1 : index
    %c0_21 = arith.constant 0 : index
    %43 = vector.load %arg2[%c1_20, %c0_21] : memref<7x256xf32, #tpu.memory_space<vmem>>, vector<1x256xf32>
    %44 = arith.mulf %42, %43 : vector<1x256xf32>
    %45 = arith.addf %29, %44 : vector<1x256xf32>
    %c2 = arith.constant 2 : index
    %c79 = arith.constant 79 : index
    %46 = vector.load %arg6[%c2, %c79] : memref<64x512xf32, #tpu.memory_space<vmem>>, vector<1x256xf32>
    %c9 = arith.constant 9 : index
    %c95 = arith.constant 95 : index
    %47 = vector.load %arg6[%c9, %c95] : memref<64x512xf32, #tpu.memory_space<vmem>>, vector<1x256xf32>
    %48 = arith.addf %46, %47 : vector<1x256xf32>
    %c16 = arith.constant 16 : index
    %c111 = arith.constant 111 : index
    %49 = vector.load %arg6[%c16, %c111] : memref<64x512xf32, #tpu.memory_space<vmem>>, vector<1x256xf32>
    %50 = arith.addf %48, %49 : vector<1x256xf32>
    %c23 = arith.constant 23 : index
    %c127 = arith.constant 127 : index
    %51 = vector.load %arg6[%c23, %c127] : memref<64x512xf32, #tpu.memory_space<vmem>>, vector<1x256xf32>
    %52 = arith.addf %50, %51 : vector<1x256xf32>
    %c30 = arith.constant 30 : index
    %c143 = arith.constant 143 : index
    %53 = vector.load %arg6[%c30, %c143] : memref<64x512xf32, #tpu.memory_space<vmem>>, vector<1x256xf32>
    %54 = arith.addf %52, %53 : vector<1x256xf32>
    %c37 = arith.constant 37 : index
    %c159 = arith.constant 159 : index
    %55 = vector.load %arg6[%c37, %c159] : memref<64x512xf32, #tpu.memory_space<vmem>>, vector<1x256xf32>
    %56 = arith.addf %54, %55 : vector<1x256xf32>
    %c44 = arith.constant 44 : index
    %c175 = arith.constant 175 : index
    %57 = vector.load %arg6[%c44, %c175] : memref<64x512xf32, #tpu.memory_space<vmem>>, vector<1x256xf32>
    %58 = arith.addf %56, %57 : vector<1x256xf32>
    %c2_22 = arith.constant 2 : index
    %c0_23 = arith.constant 0 : index
    %59 = vector.load %arg2[%c2_22, %c0_23] : memref<7x256xf32, #tpu.memory_space<vmem>>, vector<1x256xf32>
    %60 = arith.mulf %58, %59 : vector<1x256xf32>
    %61 = arith.addf %45, %60 : vector<1x256xf32>
    %c3 = arith.constant 3 : index
    %c80 = arith.constant 80 : index
    %62 = vector.load %arg6[%c3, %c80] : memref<64x512xf32, #tpu.memory_space<vmem>>, vector<1x256xf32>
    %c10 = arith.constant 10 : index
    %c96 = arith.constant 96 : index
    %63 = vector.load %arg6[%c10, %c96] : memref<64x512xf32, #tpu.memory_space<vmem>>, vector<1x256xf32>
    %64 = arith.addf %62, %63 : vector<1x256xf32>
    %c17 = arith.constant 17 : index
    %c112 = arith.constant 112 : index
    %65 = vector.load %arg6[%c17, %c112] : memref<64x512xf32, #tpu.memory_space<vmem>>, vector<1x256xf32>
    %66 = arith.addf %64, %65 : vector<1x256xf32>
    %c24 = arith.constant 24 : index
    %c128_24 = arith.constant 128 : index
    %67 = vector.load %arg6[%c24, %c128_24] : memref<64x512xf32, #tpu.memory_space<vmem>>, vector<1x256xf32>
    %68 = arith.addf %66, %67 : vector<1x256xf32>
    %c31 = arith.constant 31 : index
    %c144 = arith.constant 144 : index
    %69 = vector.load %arg6[%c31, %c144] : memref<64x512xf32, #tpu.memory_space<vmem>>, vector<1x256xf32>
    %70 = arith.addf %68, %69 : vector<1x256xf32>
    %c38 = arith.constant 38 : index
    %c160 = arith.constant 160 : index
    %71 = vector.load %arg6[%c38, %c160] : memref<64x512xf32, #tpu.memory_space<vmem>>, vector<1x256xf32>
    %72 = arith.addf %70, %71 : vector<1x256xf32>
    %c45 = arith.constant 45 : index
    %c176 = arith.constant 176 : index
    %73 = vector.load %arg6[%c45, %c176] : memref<64x512xf32, #tpu.memory_space<vmem>>, vector<1x256xf32>
    %74 = arith.addf %72, %73 : vector<1x256xf32>
    %75 = arith.addf %61, %74 : vector<1x256xf32>
    %c4_25 = arith.constant 4 : index
    %c81 = arith.constant 81 : index
    %76 = vector.load %arg6[%c4_25, %c81] : memref<64x512xf32, #tpu.memory_space<vmem>>, vector<1x256xf32>
    %c11 = arith.constant 11 : index
    %c97 = arith.constant 97 : index
    %77 = vector.load %arg6[%c11, %c97] : memref<64x512xf32, #tpu.memory_space<vmem>>, vector<1x256xf32>
    %78 = arith.addf %76, %77 : vector<1x256xf32>
    %c18 = arith.constant 18 : index
    %c113 = arith.constant 113 : index
    %79 = vector.load %arg6[%c18, %c113] : memref<64x512xf32, #tpu.memory_space<vmem>>, vector<1x256xf32>
    %80 = arith.addf %78, %79 : vector<1x256xf32>
    %c25 = arith.constant 25 : index
    %c129 = arith.constant 129 : index
    %81 = vector.load %arg6[%c25, %c129] : memref<64x512xf32, #tpu.memory_space<vmem>>, vector<1x256xf32>
    %82 = arith.addf %80, %81 : vector<1x256xf32>
    %c32 = arith.constant 32 : index
    %c145 = arith.constant 145 : index
    %83 = vector.load %arg6[%c32, %c145] : memref<64x512xf32, #tpu.memory_space<vmem>>, vector<1x256xf32>
    %84 = arith.addf %82, %83 : vector<1x256xf32>
    %c39 = arith.constant 39 : index
    %c161 = arith.constant 161 : index
    %85 = vector.load %arg6[%c39, %c161] : memref<64x512xf32, #tpu.memory_space<vmem>>, vector<1x256xf32>
    %86 = arith.addf %84, %85 : vector<1x256xf32>
    %c46 = arith.constant 46 : index
    %c177 = arith.constant 177 : index
    %87 = vector.load %arg6[%c46, %c177] : memref<64x512xf32, #tpu.memory_space<vmem>>, vector<1x256xf32>
    %88 = arith.addf %86, %87 : vector<1x256xf32>
    %c4_26 = arith.constant 4 : index
    %c0_27 = arith.constant 0 : index
    %89 = vector.load %arg2[%c4_26, %c0_27] : memref<7x256xf32, #tpu.memory_space<vmem>>, vector<1x256xf32>
    %90 = arith.mulf %88, %89 : vector<1x256xf32>
    %91 = arith.addf %75, %90 : vector<1x256xf32>
    %c5 = arith.constant 5 : index
    %c82 = arith.constant 82 : index
    %92 = vector.load %arg6[%c5, %c82] : memref<64x512xf32, #tpu.memory_space<vmem>>, vector<1x256xf32>
    %c12 = arith.constant 12 : index
    %c98 = arith.constant 98 : index
    %93 = vector.load %arg6[%c12, %c98] : memref<64x512xf32, #tpu.memory_space<vmem>>, vector<1x256xf32>
    %94 = arith.addf %92, %93 : vector<1x256xf32>
    %c19 = arith.constant 19 : index
    %c114 = arith.constant 114 : index
    %95 = vector.load %arg6[%c19, %c114] : memref<64x512xf32, #tpu.memory_space<vmem>>, vector<1x256xf32>
    %96 = arith.addf %94, %95 : vector<1x256xf32>
    %c26 = arith.constant 26 : index
    %c130 = arith.constant 130 : index
    %97 = vector.load %arg6[%c26, %c130] : memref<64x512xf32, #tpu.memory_space<vmem>>, vector<1x256xf32>
    %98 = arith.addf %96, %97 : vector<1x256xf32>
    %c33 = arith.constant 33 : index
    %c146 = arith.constant 146 : index
    %99 = vector.load %arg6[%c33, %c146] : memref<64x512xf32, #tpu.memory_space<vmem>>, vector<1x256xf32>
    %100 = arith.addf %98, %99 : vector<1x256xf32>
    %c40 = arith.constant 40 : index
    %c162 = arith.constant 162 : index
    %101 = vector.load %arg6[%c40, %c162] : memref<64x512xf32, #tpu.memory_space<vmem>>, vector<1x256xf32>
    %102 = arith.addf %100, %101 : vector<1x256xf32>
    %c47 = arith.constant 47 : index
    %c178 = arith.constant 178 : index
    %103 = vector.load %arg6[%c47, %c178] : memref<64x512xf32, #tpu.memory_space<vmem>>, vector<1x256xf32>
    %104 = arith.addf %102, %103 : vector<1x256xf32>
    %c5_28 = arith.constant 5 : index
    %c0_29 = arith.constant 0 : index
    %105 = vector.load %arg2[%c5_28, %c0_29] : memref<7x256xf32, #tpu.memory_space<vmem>>, vector<1x256xf32>
    %106 = arith.mulf %104, %105 : vector<1x256xf32>
    %107 = arith.addf %91, %106 : vector<1x256xf32>
    %c6 = arith.constant 6 : index
    %c83 = arith.constant 83 : index
    %108 = vector.load %arg6[%c6, %c83] : memref<64x512xf32, #tpu.memory_space<vmem>>, vector<1x256xf32>
    %c13 = arith.constant 13 : index
    %c99 = arith.constant 99 : index
    %109 = vector.load %arg6[%c13, %c99] : memref<64x512xf32, #tpu.memory_space<vmem>>, vector<1x256xf32>
    %110 = arith.addf %108, %109 : vector<1x256xf32>
    %c20 = arith.constant 20 : index
    %c115 = arith.constant 115 : index
    %111 = vector.load %arg6[%c20, %c115] : memref<64x512xf32, #tpu.memory_space<vmem>>, vector<1x256xf32>
    %112 = arith.addf %110, %111 : vector<1x256xf32>
    %c27 = arith.constant 27 : index
    %c131 = arith.constant 131 : index
    %113 = vector.load %arg6[%c27, %c131] : memref<64x512xf32, #tpu.memory_space<vmem>>, vector<1x256xf32>
    %114 = arith.addf %112, %113 : vector<1x256xf32>
    %c34 = arith.constant 34 : index
    %c147 = arith.constant 147 : index
    %115 = vector.load %arg6[%c34, %c147] : memref<64x512xf32, #tpu.memory_space<vmem>>, vector<1x256xf32>
    %116 = arith.addf %114, %115 : vector<1x256xf32>
    %c41 = arith.constant 41 : index
    %c163 = arith.constant 163 : index
    %117 = vector.load %arg6[%c41, %c163] : memref<64x512xf32, #tpu.memory_space<vmem>>, vector<1x256xf32>
    %118 = arith.addf %116, %117 : vector<1x256xf32>
    %c48 = arith.constant 48 : index
    %c179 = arith.constant 179 : index
    %119 = vector.load %arg6[%c48, %c179] : memref<64x512xf32, #tpu.memory_space<vmem>>, vector<1x256xf32>
    %120 = arith.addf %118, %119 : vector<1x256xf32>
    %c6_30 = arith.constant 6 : index
    %c0_31 = arith.constant 0 : index
    %121 = vector.load %arg2[%c6_30, %c0_31] : memref<7x256xf32, #tpu.memory_space<vmem>>, vector<1x256xf32>
    %122 = arith.mulf %120, %121 : vector<1x256xf32>
    %123 = arith.addf %107, %122 : vector<1x256xf32>
    %124 = arith.negf %123 : vector<1x256xf32>
    %125 = math.exp %124 : vector<1x256xf32>
    %cst_32 = arith.constant 1.000000e+00 : f32
    %126 = vector.broadcast %cst_32 : f32 to vector<1x256xf32>
    %127 = arith.addf %126, %125 : vector<1x256xf32>
    %128 = arith.divf %126, %127 : vector<1x256xf32>
    %c0_33 = arith.constant 0 : index
    %c0_34 = arith.constant 0 : index
    %c0_35 = arith.constant 0 : index
    %129 = vector.load %arg3[%c0_33, %c0_34, %c0_35] : memref<1x4x256xf32, #tpu.memory_space<vmem>>, vector<1x4x256xf32>
    %130 = vector.shape_cast %129 : vector<1x4x256xf32> to vector<4x256xf32>
    %131 = vector.broadcast %128 : vector<1x256xf32> to vector<4x256xf32>
    %132 = arith.mulf %130, %131 : vector<4x256xf32>
    %c0_36 = arith.constant 0 : index
    %c0_37 = arith.constant 0 : index
    %c0_38 = arith.constant 0 : index
    %133 = vector.load %arg4[%c0_36, %c0_37, %c0_38] : memref<1x4x256xf32, #tpu.memory_space<vmem>>, vector<1x4x256xf32>
    %134 = vector.shape_cast %133 : vector<1x4x256xf32> to vector<4x256xf32>
    %135 = vector.shape_cast %132 : vector<4x256xf32> to vector<1x4x256xf32>
    tpu.vector_store %arg4[%c0_36, %c0_37, %c0_38], %135 {strides = array<i32>} : memref<1x4x256xf32, #tpu.memory_space<vmem>>, vector<1x4x256xf32>,
    return
  }
  func.func @transform_0(%arg0: i32) -> (i32, i32) {
    %c0_i32 = arith.constant 0 : i32
    %c0_i32_0 = arith.constant 0 : i32
    %c0_i32_1 = arith.constant 0 : i32
    return %c0_i32, %c0_i32_0 : i32, i32
  }
  func.func @transform_1(%arg0: i32) -> (i32, i32) {
    %c0_i32 = arith.constant 0 : i32
    %c0_i32_0 = arith.constant 0 : i32
    %c0_i32_1 = arith.constant 0 : i32
    return %c0_i32, %c0_i32_0 : i32, i32
  }
  func.func @transform_2(%arg0: i32) -> (i32, i32, i32) {
    %c0_i32 = arith.constant 0 : i32
    %c0_i32_0 = arith.constant 0 : i32
    %c0_i32_1 = arith.constant 0 : i32
    return %arg0, %c0_i32, %c0_i32_0 : i32, i32, i32
  }
  func.func @transform_3(%arg0: i32) -> (i32, i32, i32) {
    %c0_i32 = arith.constant 0 : i32
    %c0_i32_0 = arith.constant 0 : i32
    %c0_i32_1 = arith.constant 0 : i32
    return %arg0, %c0_i32, %c0_i32_0 : i32, i32, i32
  }
}

</mosaic_0001>

<bundles_post_ra>
// kernel: spatial_attention.1
= control target key start
LH: loop header
LB: loop body
LE: loop exit
PB: predicated region body
PF: predicated region fallthrough
CT: control target
= control target key end

     0   :  { %s1147_s12 = smov 0   ;;  %s1402_s0 = inlined_call_operand.vmem [shape: f32[64,8], index: 0, kind: input, shape index: {}]   ;;  %s1403_s1 = inlined_call_operand.vmem [shape: f32[7,256], index: 1, kind: input, shape index: {}]   ;;  %s1404_s2 = inlined_call_operand.vmem [shape: f32[2,4,256], index: 2, kind: input, shape index: {}]   ;;  %s1405_s3 = inlined_call_operand.vmem [shape: f32[2,4,256], index: 3, kind: output, shape index: {}]  }
   0x1 LB: > { %s1016_s13 = sadd.s32 4294967295, %s1105_s12   ;;  %p1020_p0 = scmp.ge.s32.totalorder %s1105_s12, 1  ;;  %s1105_s12 = sphi %s1147_s12, %s13_s12  }
   0x2   : > { %p137_p1 = scmp.lt.s32.totalorder %s1105_s12, 3 }
   0x4   : > { %p138_p2 = pnand %p1020_p0, %p137_p1 }
   0x5   : > { %p161_p3 = scmp.lt.s32.totalorder (!%p138_p2), %s1016_s13, 1  ;;  %s1108_s5 = smov (!%p138_p2), 78  }
   0x6   : > { %141 = sbr.rel (%p138_p2) target bundleno = 676 (0x2a4), region = 32  ;;  %s1109_s10 = smov (!%p138_p2), 79  }
   0x7   : > { %s1110_s15 = smov (!%p138_p2), 81   ;;  %s1111_s17 = smov (!%p138_p2), 112  }
   0x8   : > { %s1112_s18 = smov (!%p138_p2), 96   ;;  %s1114_s20 = smov (!%p138_p2), 64  }
   0x9   : > { %s1115_s21 = smov (!%p138_p2), 32   ;;  %s1116_s22 = smov (!%p138_p2), 48  }
   0xa   : > { %s1117_s25 = smov (!%p138_p2), 82   ;;  %s1118_s28 = smov (!%p138_p2), 83  }
   0xb   : > { %v1107_v0 = vmov 0.0   ;;  %v184_v1 = vld [vmem:[%s1402_s0] sm:$0xff]  ;;  %vm196_vm0 = vcmask 64512   ;;  %s1407_s13 = smov (!%p161_p3, %s1016_s13), 1  ;;  %v185_v3 = vld [vmem:[%s1402_s0 + $0x8] sm:$0xff]  ;;  %v186_v6 = vld [vmem:[%s1402_s0 + $0x10] sm:$0xff] }
   0xc   : > { %174 = vst [vmem:[#allocation2 + $0x18] sm:$0xf0] %v1107_v0  ;;  %236 = vmatpush.msra.mxu0 %v1107_v0  ;;  %359 = vmatpush.msra.mxu3 %v1107_v0  ;;  %s1065_s16 = sshll.u32 %s1407_s13, 3  ;;  %v187_v9 = vld [vmem:[%s1402_s0 + $0x18] sm:$0xff]  ;;  %v188_v10 = vld [vmem:[%s1402_s0 + $0x20] sm:$0xff]  ;;  %v189_v11 = vld [vmem:[%s1402_s0 + $0x28] sm:$0xff] }
   0xd   : > { %1025 = vmatmul.msk.f32.vlgmr.msra.gmra.mxu0 %vm196_vm0, %v184_v1  ;;  %1049 = vmatmul.msk.f32.vlgmr.msra.gmra.mxu3 %vm196_vm0, %v184_v1  ;;  %173 = vst [vmem:[#allocation2 + $0x10] sm:$0xf0] %v1107_v0  ;;  %s165_s19 = scalar_lea.vmem %s1404_s2, %s1065_s16  ;;  %v1057_v12 = vld [vmem:[%s1403_s1 + $0x1] ss:$8 sm:$0x3]  ;;  %v190_v13 = vld [vmem:[%s1402_s0 + $0x30] sm:$0xff] }
   0xe   : > { %v1168_v2 = vld [vmem:[%s165_s19] sm:$0xff]  ;;  %547 = vrot.lane.b32.xlu2 %v1057_v12, %s1108_s5  ;;  %s1113_s19 = smov 80   ;;  %vm424_vm1 = vcmask 916480   ;;  %vm434_vm2 = vcmask 785408   ;;  %s1119_s4 = smov 77   ;;  %vm444_vm3 = vcmask 654336  }
   0xf   : > { %177 = vst [vmem:[#allocation1] ss:$2 sm:$0xff] %v1168_v2  ;;  %v1058_v14 = vld [vmem:[%s1403_s1 + $0x2] ss:$8 sm:$0x3]  ;;  %vm454_vm4 = vcmask 523264  }
  0x10   : > { %v1059_v16 = vld [vmem:[%s1403_s1 + $0x4] ss:$8 sm:$0x3]  ;;  %vm464_vm5 = vcmask 392192   ;;  %vm474_vm6 = vcmask 261120   ;;  %vm550_vm7 = vcmask 637952  }
  0x11   : > { %s1120_s5 = smov 127   ;;  %vm762_vm8 = vcmask 662528   ;;  %vm624_vm9 = vcmask 646144   ;;  %s1121_s6 = smov 124   ;;  %vm836_vm10 = vcmask 670720   ;;  %vm910_vm11 = vcmask 678912  }
  0x12   : > { %s1122_s7 = smov 126   ;;  %s1123_s8 = smov 125   ;;  %vm483_vm12 = vcmask 629760   ;;  %vm558_vm13 = vcmask 1039360   ;;  %vm632_vm14 = vcmask 1031168   ;;  %vm696_vm15 = vcmask 1022976  }
  0x13   : > { %s1124_s9 = smov 123  }
  0x15   : > { %1026 = vmatmul.msk.f32.gmra.mxu0 %vm196_vm0, %v185_v3  ;;  %1050 = vmatmul.msk.f32.gmra.mxu3 %vm196_vm0, %v185_v3 }
  0x16   : > { %v179_v4 = vld.sshfl [vmem:[#allocation1 + $0x8] sm:$0xff pattern:$0x75316420]  ;;  %v178_v5 = vld.sshfl [vmem:[#allocation1] sm:$0xff pattern:$0x75316420]  ;;  %621 = vrot.lane.b32.xlu2 %v1058_v14, %s1109_s10 }
  0x17   : > { %183 = vst [vmem:[#allocation2 + $0x18] sm:$0xf] %v179_v4  ;;  %v1060_v4 = vld [vmem:[%s1403_s1 + $0x5] ss:$8 sm:$0x3]  ;;  %s1125_s10 = smov 122  }
  0x18   : > { %182 = vst [vmem:[#allocation2 + $0x10] sm:$0xf] %v178_v5 }
  0x1d   : > { %1027 = vmatmul.msk.f32.gmra.mxu0 %vm196_vm0, %v186_v6  ;;  %1051 = vmatmul.msk.f32.gmra.mxu3 %vm196_vm0, %v186_v6 }
  0x1e   : > { %v194_v7 = vld [vmem:[#allocation2 + $0x18] sm:$0xff]  ;;  %759 = vrot.lane.b32.xlu2 %v1059_v16, %s1110_s15  ;;  %s1126_s15 = smov 51  }
  0x1f   : > { %318 = vmatpush.msra.mxu2 %v194_v7  ;;  %v193_v8 = vld [vmem:[#allocation2 + $0x10] sm:$0xff] }
  0x20   : > { %1041 = vmatmul.msk.f32.vlgmr.msra.gmra.mxu2 %vm196_vm0, %v184_v1  ;;  %277 = vmatpush.msra.mxu1 %v193_v8 }
  0x21   : > { %1033 = vmatmul.msk.f32.vlgmr.msra.gmra.mxu1 %vm196_vm0, %v184_v1 }
  0x25   : > { %1052 = vmatmul.msk.f32.gmra.mxu3 %vm196_vm0, %v187_v9  ;;  %1028 = vmatmul.msk.f32.gmra.mxu0 %vm196_vm0, %v187_v9 }
  0x28   : > { %1042 = vmatmul.msk.f32.gmra.mxu2 %vm196_vm0, %v185_v3 }
  0x29   : > { %1034 = vmatmul.msk.f32.gmra.mxu1 %vm196_vm0, %v185_v3 }
  0x2d   : > { %1053 = vmatmul.msk.f32.gmra.mxu3 %vm196_vm0, %v188_v10  ;;  %1029 = vmatmul.msk.f32.gmra.mxu0 %vm196_vm0, %v188_v10 }
  0x30   : > { %1043 = vmatmul.msk.f32.gmra.mxu2 %vm196_vm0, %v186_v6 }
  0x31   : > { %1035 = vmatmul.msk.f32.gmra.mxu1 %vm196_vm0, %v186_v6 }
  0x35   : > { %1054 = vmatmul.msk.f32.gmra.mxu3 %vm196_vm0, %v189_v11  ;;  %1030 = vmatmul.msk.f32.gmra.mxu0 %vm196_vm0, %v189_v11 }
  0x38   : > { %1044 = vmatmul.msk.f32.gmra.mxu2 %vm196_vm0, %v187_v9 }
  0x39   : > { %1036 = vmatmul.msk.f32.gmra.mxu1 %vm196_vm0, %v187_v9 }
  0x3d   : > { %1055 = vmatmul.msk.f32.gmra.mxu3 %vm196_vm0, %v190_v13  ;;  %1031 = vmatmul.msk.f32.gmra.mxu0 %vm196_vm0, %v190_v13 }
  0x40   : > { %1045 = vmatmul.msk.f32.gmra.mxu2 %vm196_vm0, %v188_v10 }
  0x41   : > { %1037 = vmatmul.msk.f32.gmra.mxu1 %vm196_vm0, %v188_v10 }
  0x48   : > { %1046 = vmatmul.msk.f32.gmra.mxu2 %vm196_vm0, %v189_v11 }
  0x49   : > { %1038 = vmatmul.msk.f32.gmra.mxu1 %vm196_vm0, %v189_v11 }
  0x50   : > { %1047 = vmatmul.msk.f32.gmra.mxu2 %vm196_vm0, %v190_v13 }
  0x51   : > { %1039 = vmatmul.msk.f32.gmra.mxu1 %vm196_vm0, %v190_v13 }
  0x68   : > { %v1254_v5 = vpop.permute.xlu2 %547 }
  0x70   : > { %v1260_v11 = vpop.permute.xlu2 %621 }
  0x8a   : > { %v238_v15 = vpop.f32.mrf.mxu0 }
  0x8b   : > { %385 = vst [vmem:[#allocation3] sm:$0xff] %v238_v15  ;;  %v1266_v15 = vpop.permute.xlu2 %759 }
  0x90   : > { %v361_v17 = vpop.f32.mrf.mxu3 }
  0x92   : > { %v241_v18 = vpop.f32.mrf.mxu0 }
  0x93   : > { %389 = vst [vmem:[#allocation3 + $0x20] sm:$0xff] %v241_v18 }
  0x98   : > { %v364_v19 = vpop.f32.mrf.mxu3 }
  0x99   : > { %v1061_v19 = vld [vmem:[%s1403_s1 + $0x6] ss:$8 sm:$0x3] }
  0x9a   : > { %v244_v20 = vpop.f32.mrf.mxu0 }
  0x9b   : > { %393 = vst [vmem:[#allocation3 + $0x40] sm:$0xff] %v244_v20 }
  0x9e   : > { %v279_v22 = vpop.f32.mrf.mxu1 }
  0x9f   : > { %386 = vst [vmem:[#allocation3 + $0x8] sm:$0xff] %v279_v22 }
  0xa0   : > { %v367_v21 = vpop.f32.mrf.mxu3 }
  0xa3   : > { %v320_v23 = vpop.f32.mrf.mxu2 }
  0xa4   : > { %387 = vst [vmem:[#allocation3 + $0x10] sm:$0xff] %v320_v23 }
  0xa6   : > { %v282_v25 = vpop.f32.mrf.mxu1 }
  0xa7   : > { %390 = vst [vmem:[#allocation3 + $0x28] sm:$0xff] %v282_v25 }
  0xa8   : > { %v370_v24 = vpop.f32.mrf.mxu3 }
  0xa9   : > { %400 = vst [vmem:[#allocation3 + $0x78] sm:$0xff] %v370_v24 }
  0xab   : > { %v323_v26 = vpop.f32.mrf.mxu2  ;;  %v419_v10 = vld [vmem:[#allocation3 + $0x7] ss:$8 sm:$0x7] }
  0xac   : > { %391 = vst [vmem:[#allocation3 + $0x30] sm:$0xff] %v323_v26 }
  0xae   : > { %v285_v28 = vpop.f32.mrf.mxu1 }
  0xaf   : > { %394 = vst [vmem:[#allocation3 + $0x48] sm:$0xff] %v285_v28  ;;  %v563_v28 = vld [vmem:[#allocation3 + $0x2] ss:$8 sm:$0x7] }
  0xb0   : > { %v373_v27 = vpop.f32.mrf.mxu3 }
  0xb1   : > { %404 = vst [vmem:[#allocation3 + $0x98] sm:$0xff] %v373_v27 }
  0xb3   : > { %v326_v29 = vpop.f32.mrf.mxu2  ;;  %v703_v30 = vld [vmem:[#allocation3 + $0x23] ss:$8 sm:$0x7]  ;;  %v565_v31 = vld [vmem:[#allocation3 + $0x21] ss:$8 sm:$0x7] }
  0xb4   : > { %395 = vst [vmem:[#allocation3 + $0x50] sm:$0xff] %v326_v29  ;;  %705 = vrot.lane.b32.xlu2 %v703_v30, %s1111_s17  ;;  %567 = vrot.lane.b32.xlu1 %v565_v31, %s1111_s17  ;;  %v491_v32 = vld [vmem:[#allocation3 + $0x20] ss:$8 sm:$0x7] }
  0xb5   : > { %493 = vrot.lane.b32.xlu0 %v491_v32, %s1111_s17  ;;  %v639_v34 = vld [vmem:[#allocation3 + $0x22] ss:$8 sm:$0x7]  ;;  %v500_v37 = vld [vmem:[#allocation3 + $0x27] ss:$8 sm:$0x7] }
  0xb6   : > { %v288_v33 = vpop.f32.mrf.mxu1  ;;  %v777_v42 = vld [vmem:[#allocation3 + $0x24] ss:$8 sm:$0x7]  ;;  %v851_v46 = vld [vmem:[#allocation3 + $0x25] ss:$8 sm:$0x7] }
  0xb7   : > { %398 = vst [vmem:[#allocation3 + $0x68] sm:$0xff] %v288_v33  ;;  %v429_v23 = vld [vmem:[#allocation3 + $0x26] ss:$8 sm:$0x7] }
  0xb8   : > { %v376_v38 = vpop.f32.mrf.mxu3  ;;  %v478_v33 = vld [vmem:[%s1403_s1] ss:$8 sm:$0x3] }
  0xb9   : > { %408 = vst [vmem:[#allocation3 + $0xb8] sm:$0xff] %v376_v38 }
  0xbb   : > { %v574_v35 = vld [vmem:[#allocation3 + $0x40] ss:$8 sm:$0x7]  ;;  %v329_v36 = vpop.f32.mrf.mxu2  ;;  %v648_v40 = vld [vmem:[#allocation3 + $0x41] ss:$8 sm:$0x7] }
  0xbc   : > { %641 = vrot.lane.b32.xlu1 %v639_v34, %s1111_s17  ;;  %576 = vrot.lane.b32.xlu2 %v574_v35, %s1112_s18  ;;  %399 = vst [vmem:[#allocation3 + $0x70] sm:$0xff] %v329_v36  ;;  %v583_v41 = vld [vmem:[#allocation3 + $0x47] ss:$8 sm:$0x7] }
  0xbd   : > { %502 = vrot.lane.b32.xlu0 %v500_v37, %s1112_s18  ;;  %v712_v48 = vld [vmem:[#allocation3 + $0x42] ss:$8 sm:$0x7]  ;;  %v509_v50 = vld [vmem:[#allocation3 + $0x46] ss:$8 sm:$0x7] }
  0xbe   : > { %v291_v39 = vpop.f32.mrf.mxu1  ;;  %v786_v51 = vld [vmem:[#allocation3 + $0x43] ss:$8 sm:$0x7]  ;;  %v860_v54 = vld [vmem:[#allocation3 + $0x44] ss:$8 sm:$0x7] }
  0xbf   : > { %402 = vst [vmem:[#allocation3 + $0x88] sm:$0xff] %v291_v39  ;;  %v439_v22 = vld [vmem:[#allocation3 + $0x45] ss:$8 sm:$0x7] }
  0xc0   : > { %v379_v1 = vpop.f32.mrf.mxu3 }
  0xc1   : > { %412 = vst [vmem:[#allocation3 + $0xd8] sm:$0xff] %v379_v1 }
  0xc3   : > { %v332_v43 = vpop.f32.mrf.mxu2  ;;  %v518_v45 = vld [vmem:[#allocation3 + $0x6d] ss:$8 sm:$0x7]  ;;  %v721_v49 = vld [vmem:[#allocation3 + $0x69] ss:$8 sm:$0x7] }
  0xc4   : > { %779 = vrot.lane.b32.xlu1 %v777_v42, %s1111_s17  ;;  %650 = vrot.lane.b32.xlu2 %v648_v40, %s1112_s18  ;;  %403 = vst [vmem:[#allocation3 + $0x90] sm:$0xff] %v332_v43  ;;  %v795_v53 = vld [vmem:[#allocation3 + $0x6a] ss:$8 sm:$0x7] }
  0xc5   : > { %585 = vrot.lane.b32.xlu0 %v583_v41, %s1113_s19  ;;  %v592_v56 = vld [vmem:[#allocation3 + $0x6e] ss:$8 sm:$0x7]  ;;  %v869_v57 = vld [vmem:[#allocation3 + $0x6b] ss:$8 sm:$0x7] }
  0xc6   : > { %v294_v44 = vpop.f32.mrf.mxu1  ;;  %v657_v60 = vld [vmem:[#allocation3 + $0x68] ss:$8 sm:$0x3]  ;;  %v666_v0 = vld [vmem:[#allocation3 + $0x6f] ss:$8 sm:$0x7] }
  0xc7   : > { %406 = vst [vmem:[#allocation3 + $0xa8] sm:$0xff] %v294_v44  ;;  %v449_v13 = vld [vmem:[#allocation3 + $0x6c] ss:$8 sm:$0x7] }
  0xcb   : > { %v335_v47 = vpop.f32.mrf.mxu2  ;;  %v730_v52 = vld [vmem:[#allocation3 + $0x88] ss:$8 sm:$0x7]  ;;  %v804_v55 = vld [vmem:[#allocation3 + $0x89] ss:$8 sm:$0x7] }
  0xcc   : > { %853 = vrot.lane.b32.xlu1 %v851_v46, %s1111_s17  ;;  %520 = vrot.lane.b32.xlu2 %v518_v45, %s1114_s20  ;;  %407 = vst [vmem:[#allocation3 + $0xb0] sm:$0xff] %v335_v47  ;;  %v527_v59 = vld [vmem:[#allocation3 + $0x8c] ss:$8 sm:$0x7] }
  0xcd   : > { %714 = vrot.lane.b32.xlu0 %v712_v48, %s1112_s18  ;;  %v601_v3 = vld [vmem:[#allocation3 + $0x8d] ss:$8 sm:$0x7]  ;;  %v739_v6 = vld [vmem:[#allocation3 + $0x8f] ss:$8 sm:$0x7] }
  0xce   : > { %v297_v62 = vpop.f32.mrf.mxu1  ;;  %v675_v7 = vld [vmem:[#allocation3 + $0x8e] ss:$8 sm:$0x7]  ;;  %v878_v9 = vld [vmem:[#allocation3 + $0x8a] ss:$8 sm:$0x7] }
  0xcf   : > { %410 = vst [vmem:[#allocation3 + $0xc8] sm:$0xff] %v297_v62  ;;  %v459_v34 = vld [vmem:[#allocation3 + $0x8b] ss:$8 sm:$0x7] }
  0xd3   : > { %v536_v58 = vld [vmem:[#allocation3 + $0xab] ss:$8 sm:$0x7]  ;;  %v748_v61 = vld [vmem:[#allocation3 + $0xae] ss:$8 sm:$0x7]  ;;  %v338_v63 = vpop.f32.mrf.mxu2 }
  0xd4   : > { %511 = vrot.lane.b32.xlu1 %v509_v50, %s1113_s19  ;;  %723 = vrot.lane.b32.xlu2 %v721_v49, %s1113_s19  ;;  %411 = vst [vmem:[#allocation3 + $0xd0] sm:$0xff] %v338_v63  ;;  %v610_v8 = vld [vmem:[#allocation3 + $0xac] ss:$8 sm:$0x7] }
  0xd5   : > { %788 = vrot.lane.b32.xlu0 %v786_v51, %s1112_s18  ;;  %v684_v12 = vld [vmem:[#allocation3 + $0xad] ss:$8 sm:$0x7]  ;;  %v813_v14 = vld [vmem:[#allocation3 + $0xa8] ss:$8 sm:$0x7] }
  0xd6   : > { %v887_v16 = vld [vmem:[#allocation3 + $0xa9] ss:$8 sm:$0x7]  ;;  %v822_v17 = vld [vmem:[#allocation3 + $0xaf] ss:$8 sm:$0x7] }
  0xd7   : > { %v469_v32 = vld [vmem:[#allocation3 + $0xaa] ss:$8 sm:$0x7] }
  0xdb   : > { %v896_v20 = vld [vmem:[#allocation3 + $0xc8] ss:$8 sm:$0x7] }
  0xdc   : > { %862 = vrot.lane.b32.xlu1 %v860_v54, %s1112_s18  ;;  %732 = vrot.lane.b32.xlu2 %v730_v52, %s1114_s20 }
  0xdd   : > { %797 = vrot.lane.b32.xlu0 %v795_v53, %s1113_s19 }
  0xe4   : > { %594 = vrot.lane.b32.xlu1 %v592_v56, %s1114_s20  ;;  %806 = vrot.lane.b32.xlu2 %v804_v55, %s1114_s20 }
  0xe5   : > { %871 = vrot.lane.b32.xlu0 %v869_v57, %s1113_s19  ;;  %v489_v57 = vld [vmem:[#allocation3 + $0x1] ss:$8 sm:$0x7] }
  0xec   : > { %659 = vrot.lane.b32.xlu1 %v657_v60, %s1113_s19  ;;  %538 = vrot.lane.b32.xlu2 %v536_v58, %s1115_s21 }
  0xed   : > { %529 = vrot.lane.b32.xlu0 %v527_v59, %s1116_s22 }
  0xf4   : > { %668 = vrot.lane.b32.xlu1 %v666_v0, %s1114_s20  ;;  %750 = vrot.lane.b32.xlu2 %v748_v61, %s1115_s21 }
  0xf5   : > { %603 = vrot.lane.b32.xlu0 %v601_v3, %s1116_s22 }
  0xfc   : > { %741 = vrot.lane.b32.xlu1 %v739_v6, %s1116_s22  ;;  %833 = vrot.lane.b32.xlu2 %v1060_v4, %s1117_s25 }
  0xfd   : > { %677 = vrot.lane.b32.xlu0 %v675_v7, %s1116_s22 }
 0x104   : > { %880 = vrot.lane.b32.xlu1 %v878_v9, %s1114_s20  ;;  %421 = vrot.lane.b32.xlu2 %v419_v10, %s1111_s17 }
 0x105   : > { %612 = vrot.lane.b32.xlu0 %v610_v8, %s1115_s21 }
 0x10c   : > { %686 = vrot.lane.b32.xlu1 %v684_v12, %s1115_s21  ;;  %451 = vrot.lane.b32.xlu2 %v449_v13, %s1114_s20  ;;  %v549_v12 = vrot.slane %v1254_v5, 7 }
 0x10d   : > { %815 = vrot.lane.b32.xlu0 %v813_v14, %s1116_s22 }
 0x10e   : > { %v1270_v18 = vpop.permute.xlu2 %705 }
 0x10f   : > { %v707_v1 = vrot.slane %v1270_v18, 1 }
 0x111   : > { %v708_v14 = vsel %vm424_vm1, %v1270_v18, %v707_v1 }
 0x114   : > { %889 = vrot.lane.b32.xlu1 %v887_v16, %s1116_s22  ;;  %480 = vrot.lane.b32.xlu2 %v478_v33, %s1119_s4 }
 0x115   : > { %824 = vrot.lane.b32.xlu0 %v822_v17, %s1115_s21 }
 0x116   : > { %v577_v21 = vpop.permute.xlu2 %576 }
 0x117   : > { %v578_v25 = vrot.slane %v577_v21, 1 }
 0x119   : > { %v579_v31 = vsel %vm434_vm2, %v577_v21, %v578_v25 }
 0x11c   : > { %907 = vrot.lane.b32.xlu1 %v1061_v19, %s1118_s28  ;;  %v701_v19 = vld [vmem:[#allocation3 + $0x4] ss:$8 sm:$0x7] }
 0x11d   : > { %898 = vrot.lane.b32.xlu0 %v896_v20, %s1115_s21 }
 0x11e   : > { %v1286_v36 = vpop.permute.xlu2 %650 }
 0x124   : > { %441 = vrot.lane.b32.xlu1 %v439_v22, %s1113_s19  ;;  %v551_v22 = vsel %vm550_vm7, %v549_v12, %v1254_v5  ;;  %vm947_vm7 = vcmask 1043456   ;;  %s170_s19 = scalar_lea.vmem %s1405_s3, %s1065_s16 }
 0x125   : > { %431 = vrot.lane.b32.xlu0 %v429_v23, %s1112_s18  ;;  %v710_v23 = vadd.f32 %v708_v14, %v701_v19 }
 0x126   : > { %v568_v24 = vpop.permute.xlu1 %567  ;;  %v521_v40 = vpop.permute.xlu2 %520 }
 0x127   : > { %v569_v26 = vrot.slane %v568_v24, 1  ;;  %v494_v27 = vpop.permute.xlu0 %493  ;;  %v522_v62 = vrot.slane %v521_v40, 7 }
 0x128   : > { %v495_v50 = vrot.slane %v494_v27, 1 }
 0x129   : > { %v570_v29 = vsel %vm424_vm1, %v568_v24, %v569_v26  ;;  %v523_v6 = vsel %vm454_vm4, %v522_v62, %v521_v40  ;;  %v652_v62 = vrot.slane %v1286_v36, 1 }
 0x12a   : > { %v572_v30 = vadd.f32 %v570_v29, %v563_v28  ;;  %v496_v53 = vsel %vm424_vm1, %v494_v27, %v495_v50 }
 0x12b   : > { %v498_v59 = vadd.f32 %v496_v53, %v489_v57 }
 0x12c   : > { %471 = vrot.lane.b32.xlu1 %v469_v32, %s1115_s21  ;;  %v1284_v35 = vadd.f32 %v579_v31, %v572_v30 }
 0x12d   : > { %461 = vrot.lane.b32.xlu0 %v459_v34, %s1116_s22 }
 0x12e   : > { %v1289_v37 = vpop.permute.xlu1 %641  ;;  %v724_v44 = vpop.permute.xlu2 %723 }
 0x12f   : > { %v503_v38 = vpop.permute.xlu0 %502  ;;  %v725_v25 = vrot.slane %v724_v44, 7  ;;  %v643_v5 = vrot.slane %v1289_v37, 1 }
 0x130   : > { %v504_v51 = vrot.slane %v503_v38, 1 }
 0x131   : > { %v726_v18 = vsel %vm444_vm3, %v725_v25, %v724_v44  ;;  %v644_v57 = vsel %vm424_vm1, %v1289_v37, %v643_v5 }
 0x132   : > { %v505_v58 = vsel %vm434_vm2, %v503_v38, %v504_v51  ;;  %v761_v51 = vrot.slane %v1266_v15, 7 }
 0x133   : > { %v507_v61 = vadd.f32 %v505_v58, %v498_v59 }
 0x136   : > { %v1291_v39 = vpop.permute.xlu1 %779  ;;  %v733_v47 = vpop.permute.xlu2 %732 }
 0x137   : > { %v1293_v41 = vpop.permute.xlu0 %585  ;;  %v734_v29 = vrot.slane %v733_v47, 7 }
 0x138   : > { %v587_v32 = vrot.slane %v1293_v41, 1 }
 0x139   : > { %v735_v31 = vsel %vm454_vm4, %v734_v29, %v733_v47 }
 0x13a   : > { %v588_v44 = vsel %vm444_vm3, %v1293_v41, %v587_v32 }
 0x13b   : > { %v590_v1 = vadd.f32 %v588_v44, %v1284_v35  ;;  %v653_v35 = vsel %vm434_vm2, %v1286_v36, %v652_v62 }
 0x13e   : > { %v1295_v42 = vpop.permute.xlu1 %853  ;;  %v1303_v52 = vpop.permute.xlu2 %806 }
 0x13f   : > { %v715_v43 = vpop.permute.xlu0 %714  ;;  %v808_v5 = vrot.slane %v1303_v52, 7 }
 0x140   : > { %v716_v9 = vrot.slane %v715_v43, 1 }
 0x142   : > { %v717_v20 = vsel %vm434_vm2, %v715_v43, %v716_v9 }
 0x143   : > { %v719_v28 = vadd.f32 %v717_v20, %v710_v23 }
 0x145   : > { %v728_v30 = vadd.f32 %v726_v18, %v719_v28 }
 0x146   : > { %v512_v45 = vpop.permute.xlu1 %511  ;;  %v539_v3 = vpop.permute.xlu2 %538 }
 0x147   : > { %v1297_v46 = vpop.permute.xlu0 %788  ;;  %v513_v54 = vrot.slane %v512_v45, 1  ;;  %v540_v7 = vrot.slane %v539_v3, 7  ;;  %v737_v50 = vadd.f32 %v735_v31, %v728_v30 }
 0x149   : > { %v514_v60 = vsel %vm444_vm3, %v512_v45, %v513_v54  ;;  %v541_v17 = vsel %vm474_vm6, %v540_v7, %v539_v3 }
 0x14a   : > { %v516_v63 = vadd.f32 %v514_v60, %v507_v61  ;;  %v763_v61 = vsel %vm762_vm8, %v761_v51, %v1266_v15  ;;  %v781_v15 = vrot.slane %v1291_v39, 1  ;;  %vm956_vm8 = vcmask 416768  }
 0x14c   : > { %v525_v10 = vadd.f32 %v523_v6, %v516_v63  ;;  %v637_v63 = vld [vmem:[#allocation3 + $0x3] ss:$8 sm:$0x7]  ;;  %v782_v23 = vsel %vm424_vm1, %v1291_v39, %v781_v15 }
 0x14d   : > { %v646_v41 = vadd.f32 %v644_v57, %v637_v63  ;;  %v849_v57 = vld [vmem:[#allocation3 + $0x6] ss:$8 sm:$0x7] }
 0x14e   : > { %v1299_v48 = vpop.permute.xlu1 %862  ;;  %v751_v33 = vpop.permute.xlu2 %750 }
 0x14f   : > { %v1301_v49 = vpop.permute.xlu0 %797  ;;  %v752_v38 = vrot.slane %v751_v33, 7 }
 0x150   : > { %v799_v36 = vrot.slane %v1301_v49, 7 }
 0x151   : > { %v753_v58 = vsel %vm474_vm6, %v752_v38, %v751_v33 }
 0x156   : > { %v595_v55 = vpop.permute.xlu1 %594  ;;  %v834_v44 = vpop.permute.xlu2 %833 }
 0x157   : > { %v1306_v56 = vpop.permute.xlu0 %871  ;;  %v596_v45 = vrot.slane %v595_v55, 7 }
 0x159   : > { %v597_v59 = vsel %vm454_vm4, %v596_v45, %v595_v55  ;;  %v623_v55 = vrot.slane %v1260_v11, 7 }
 0x15a   : > { %v599_v7 = vadd.f32 %v597_v59, %v590_v1  ;;  %v835_v59 = vrot.slane %v834_v44, 7 }
 0x15e   : > { %v1310_v0 = vpop.permute.xlu1 %659 }
 0x15f   : > { %v530_v4 = vpop.permute.xlu0 %529  ;;  %v661_v3 = vrot.slane %v1310_v0, 7 }
 0x160   : > { %v531_v8 = vrot.slane %v530_v4, 7 }
 0x161   : > { %v662_v12 = vsel %vm444_vm3, %v661_v3, %v1310_v0 }
 0x162   : > { %v532_v13 = vsel %vm464_vm5, %v531_v8, %v530_v4 }
 0x163   : > { %v534_v16 = vadd.f32 %v532_v13, %v525_v10 }
 0x165   : > { %v543_v21 = vadd.f32 %v541_v17, %v534_v16  ;;  %v790_v16 = vrot.slane %v1297_v46, 1  ;;  %v655_v17 = vadd.f32 %v653_v35, %v646_v41 }
 0x166   : > { %v669_v24 = vpop.permute.xlu1 %668 }
 0x167   : > { %v604_v26 = vpop.permute.xlu0 %603  ;;  %v553_v27 = vmul.f32 %v551_v22, %v543_v21  ;;  %v670_v8 = vrot.slane %v669_v24, 7  ;;  %v625_v22 = vsel %vm624_vm9, %v623_v55, %v1260_v11  ;;  %v664_v25 = vadd.f32 %v662_v12, %v655_v17 }
 0x168   : > { %v605_v47 = vrot.slane %v604_v26, 7  ;;  %v791_v28 = vsel %vm434_vm2, %v1297_v46, %v790_v16  ;;  %v800_v11 = vsel %vm444_vm3, %v799_v36, %v1301_v49  ;;  %v809_v49 = vsel %vm454_vm4, %v808_v5, %v1303_v52 }
 0x169   : > { %555 = vrot.lane.b32.xlu0 %v553_v27, %s1120_s5  ;;  %v671_v20 = vsel %vm454_vm4, %v670_v8, %v669_v24  ;;  %v775_v27 = vld [vmem:[#allocation3 + $0x5] ss:$8 sm:$0x7] }
 0x16a   : > { %v606_v4 = vsel %vm464_vm5, %v605_v47, %v604_v26  ;;  %v673_v29 = vadd.f32 %v671_v20, %v664_v25  ;;  %v784_v30 = vadd.f32 %v782_v23, %v775_v27  ;;  %v417_v23 = vld [vmem:[#allocation3] ss:$8 sm:$0x7] }
 0x16b   : > { %v608_v13 = vadd.f32 %v606_v4, %v599_v7  ;;  %v837_v4 = vsel %vm836_vm10, %v835_v59, %v834_v44 }
 0x16c   : > { %v793_v32 = vadd.f32 %v791_v28, %v784_v30 }
 0x16e   : > { %v742_v34 = vpop.permute.xlu1 %741 }
 0x16f   : > { %v743_v40 = vrot.slane %v742_v34, 7  ;;  %v678_v43 = vpop.permute.xlu0 %677 }
 0x170   : > { %v679_v14 = vrot.slane %v678_v43, 7 }
 0x171   : > { %v744_v53 = vsel %vm464_vm5, %v743_v40, %v742_v34  ;;  %v855_v34 = vrot.slane %v1295_v42, 1  ;;  %v802_v40 = vadd.f32 %v800_v11, %v793_v32 }
 0x172   : > { %v746_v54 = vadd.f32 %v744_v53, %v737_v50  ;;  %v680_v0 = vsel %vm464_vm5, %v679_v14, %v678_v43  ;;  %v864_v43 = vrot.slane %v1299_v48, 1  ;;  %v873_v50 = vrot.slane %v1306_v56, 7 }
 0x173   : > { %v682_v39 = vadd.f32 %v680_v0, %v673_v29  ;;  %v856_v45 = vsel %vm424_vm1, %v1295_v42, %v855_v34  ;;  %v811_v47 = vadd.f32 %v809_v49, %v802_v40 }
 0x174   : > { %v755_v60 = vadd.f32 %v753_v58, %v746_v54  ;;  %v865_v58 = vsel %vm434_vm2, %v1299_v48, %v864_v43  ;;  %v858_v42 = vadd.f32 %v856_v45, %v849_v57  ;;  %v874_v52 = vsel %vm444_vm3, %v873_v50, %v1306_v56 }
 0x176   : > { %v1338_v6 = vpop.permute.xlu1 %880  ;;  %v765_v37 = vmul.f32 %v763_v61, %v755_v60  ;;  %v867_v3 = vadd.f32 %v865_v58, %v858_v42 }
 0x177   : > { %v613_v9 = vpop.permute.xlu0 %612  ;;  %v882_v60 = vrot.slane %v1338_v6, 7 }
 0x178   : > { %v614_v10 = vrot.slane %v613_v9, 7  ;;  %767 = vrot.lane.b32.xlu0 %v765_v37, %s1121_s6  ;;  %v876_v48 = vadd.f32 %v874_v52, %v867_v3 }
 0x179   : > { %v883_v37 = vsel %vm454_vm4, %v882_v60, %v1338_v6  ;;  %v422_v6 = vpop.permute.xlu2 %421 }
 0x17a   : > { %v615_v19 = vsel %vm474_vm6, %v614_v10, %v613_v9  ;;  %v885_v55 = vadd.f32 %v883_v37, %v876_v48 }
 0x17b   : > { %v617_v21 = vadd.f32 %v615_v19, %v608_v13  ;;  %v423_v19 = vrot.slane %v422_v6, 1 }
 0x17d   : > { %v627_v26 = vmul.f32 %v625_v22, %v617_v21  ;;  %v425_v22 = vsel %vm424_vm1, %v422_v6, %v423_v19  ;;  %vm770_vm1 = vcmask 1014784  }
 0x17e   : > { %v687_v18 = vpop.permute.xlu1 %686  ;;  %v427_v25 = vadd.f32 %v425_v22, %v417_v23 }
 0x17f   : > { %v688_v24 = vrot.slane %v687_v18, 7  ;;  %v816_v31 = vpop.permute.xlu0 %815  ;;  %629 = vrot.lane.b32.xlu1 %v627_v26, %s1122_s7 }
 0x180   : > { %v817_v46 = vrot.slane %v816_v31, 7 }
 0x181   : > { %v689_v33 = vsel %vm474_vm6, %v688_v24, %v687_v18  ;;  %v452_v26 = vpop.permute.xlu2 %451 }
 0x182   : > { %v691_v38 = vadd.f32 %v689_v33, %v682_v39  ;;  %v818_v51 = vsel %vm464_vm5, %v817_v46, %v816_v31  ;;  %v453_v29 = vrot.slane %v452_v26, 7 }
 0x183   : > { %v820_v62 = vadd.f32 %v818_v51, %v811_v47 }
 0x184   : > { %693 = vrot.lane.b32.xlu2 %v691_v38, %s1123_s8  ;;  %v455_v11 = vsel %vm454_vm4, %v453_v29, %v452_v26 }
 0x186   : > { %v890_v53 = vpop.permute.xlu1 %889 }
 0x187   : > { %v825_v54 = vpop.permute.xlu0 %824  ;;  %v891_v63 = vrot.slane %v890_v53, 7 }
 0x188   : > { %v826_v61 = vrot.slane %v825_v54, 7 }
 0x189   : > { %v892_v8 = vsel %vm464_vm5, %v891_v63, %v890_v53  ;;  %v481_v33 = vpop.permute.xlu2 %480  ;;  %v191_v53 = vld [vmem:[%s1402_s0 + $0x38] sm:$0xff] }
 0x18a   : > { %v827_v1 = vsel %vm474_vm6, %v826_v61, %v825_v54  ;;  %v894_v35 = vadd.f32 %v892_v8, %v885_v55  ;;  %v482_v46 = vrot.slane %v481_v33, 7  ;;  %1048 = vmatmul.msk.f32.gmra.mxu2 %vm196_vm0, %v191_v53  ;;  %1056 = vmatmul.msk.f32.gmra.mxu3 %vm196_vm0, %v191_v53 }
 0x18b   : > { %v829_v41 = vadd.f32 %v827_v1, %v820_v62  ;;  %1032 = vmatmul.msk.f32.gmra.mxu0 %vm196_vm0, %v191_v53  ;;  %1040 = vmatmul.msk.f32.gmra.mxu1 %vm196_vm0, %v191_v53 }
 0x18c   : > { %v484_v50 = vsel %vm483_vm12, %v482_v46, %v481_v33 }
 0x18d   : > { %v839_v7 = vmul.f32 %v837_v4, %v829_v41 }
 0x18e   : > { %v908_v9 = vpop.permute.xlu1 %907 }
 0x18f   : > { %v909_v15 = vrot.slane %v908_v9, 7  ;;  %841 = vrot.lane.b32.xlu1 %v839_v7, %s1124_s9  ;;  %v899_v56 = vpop.permute.xlu0 %898 }
 0x190   : > { %v900_v10 = vrot.slane %v899_v56, 7 }
 0x191   : > { %v911_v12 = vsel %vm910_vm11, %v909_v15, %v908_v9  ;;  %v247_v15 = vpop.f32.mrf.mxu0 }
 0x192   : > { %v901_v13 = vsel %vm474_vm6, %v900_v10, %v899_v56 }
 0x193   : > { %v903_v14 = vadd.f32 %v901_v13, %v894_v35 }
 0x195   : > { %v913_v16 = vmul.f32 %v911_v12, %v903_v14 }
 0x196   : > { %v442_v21 = vpop.permute.xlu1 %441 }
 0x197   : > { %915 = vrot.lane.b32.xlu2 %v913_v16, %s1125_s10  ;;  %v432_v17 = vpop.permute.xlu0 %431  ;;  %v443_v0 = vrot.slane %v442_v21, 1 }
 0x198   : > { %v433_v20 = vrot.slane %v432_v17, 1 }
 0x199   : > { %v445_v18 = vsel %vm444_vm3, %v442_v21, %v443_v0  ;;  %vm918_vm3 = vcmask 998400   ;;  %v250_v35 = vpop.f32.mrf.mxu0 }
 0x19a   : > { %v435_v36 = vsel %vm434_vm2, %v432_v17, %v433_v20  ;;  %vm844_vm2 = vcmask 1006592  }
 0x19b   : > { %v437_v27 = vadd.f32 %v435_v36, %v427_v25 }
 0x19d   : > { %v447_v24 = vadd.f32 %v445_v18, %v437_v27 }
 0x19e   : > { %v472_v31 = vpop.permute.xlu1 %471 }
 0x19f   : > { %v462_v28 = vpop.permute.xlu0 %461  ;;  %v457_v32 = vadd.f32 %v455_v11, %v447_v24  ;;  %v473_v34 = vrot.slane %v472_v31, 7 }
 0x1a0   : > { %v463_v30 = vrot.slane %v462_v28, 7 }
 0x1a1   : > { %v475_v43 = vsel %vm474_vm6, %v473_v34, %v472_v31  ;;  %v253_v13 = vpop.f32.mrf.mxu0 }
 0x1a2   : > { %v465_v39 = vsel %vm464_vm5, %v463_v30, %v462_v28 }
 0x1a3   : > { %v467_v5 = vadd.f32 %v465_v39, %v457_v32 }
 0x1a5   : > { %v477_v49 = vadd.f32 %v475_v43, %v467_v5 }
 0x1a7   : > { %v486_v47 = vmul.f32 %v484_v50, %v477_v49 }
 0x1a9   : > { %v256_v28 = vpop.f32.mrf.mxu0 }
 0x1db   : > { %v556_v38 = vpop.permute.xlu0 %555 }
 0x1dc   : > { %v557_v45 = vrot.slane %v556_v38, 1 }
 0x1de   : > { %v559_v44 = vsel %vm558_vm13, %v556_v38, %v557_v45  ;;  %v694_v54 = vpop.permute.xlu2 %693 }
 0x1df   : > { %v561_v58 = vadd.f32 %v559_v44, %v486_v47  ;;  %v695_v59 = vrot.slane %v694_v54, 1 }
 0x1e1   : > { %v697_v42 = vsel %vm696_vm15, %v694_v54, %v695_v59 }
 0x1ea   : > { %v768_v60 = vpop.permute.xlu0 %767 }
 0x1eb   : > { %v769_v62 = vrot.slane %v768_v60, 1 }
 0x1ed   : > { %v771_v3 = vsel %vm770_vm1, %v768_v60, %v769_v62 }
 0x1f1   : > { %v630_v40 = vpop.permute.xlu1 %629  ;;  %v916_v63 = vpop.permute.xlu2 %915 }
 0x1f2   : > { %v631_v51 = vrot.slane %v630_v40, 1  ;;  %v917_v41 = vrot.slane %v916_v63, 1 }
 0x1f4   : > { %v633_v57 = vsel %vm632_vm14, %v630_v40, %v631_v51  ;;  %v919_v8 = vsel %vm918_vm3, %v916_v63, %v917_v41 }
 0x1f5   : > { %v635_v61 = vadd.f32 %v633_v57, %v561_v58 }
 0x1f7   : > { %v699_v52 = vadd.f32 %v697_v42, %v635_v61 }
 0x1f9   : > { %v773_v37 = vadd.f32 %v771_v3, %v699_v52 }
 0x201   : > { %v842_v1 = vpop.permute.xlu1 %841 }
 0x202   : > { %v843_v4 = vrot.slane %v842_v1, 1 }
 0x204   : > { %v845_v48 = vsel %vm844_vm2, %v842_v1, %v843_v4 }
 0x205   : > { %v847_v7 = vadd.f32 %v845_v48, %v773_v37 }
 0x207   : > { %v921_v9 = vadd.f32 %v919_v8, %v847_v7 }
 0x208   : > { %v259_v29 = vpop.f32.mrf.mxu0  ;;  %v300_v18 = vpop.f32.mrf.mxu1 }
 0x209   : > { %v1062_v55 = vmul.f32 -1.442695, %v921_v9 }
 0x20b   : > { %1095 = vpow2.f32 %v1062_v55 }
 0x20d   : > { %v341_v30 = vpop.f32.mrf.mxu2  ;;  %v382_v24 = vpop.f32.mrf.mxu3 }
 0x211   : > { %v1096_v56 = vpop.eup %1095 }
 0x212   : > { %v925_v10 = vadd.f32 1.0, %v1096_v56 }
 0x214   : > { %1097 = vrcp.f32 %v925_v10  ;;  %v937_v6 = vand.u32 2147483648, %v925_v10  ;;  %v935_v19 = vand.u32 2147483647, %v925_v10  ;;  %vm931_vm4 = vweird.f32 %v925_v10 }
 0x216   : > { %v938_v21 = vor.u32 1.1754944e-38, %v937_v6  ;;  %vm936_vm6 = vcmp.eq.f32.partialorder %v935_v19, 8.507059e+37 }
 0x21a   : > { %v1098_v12 = vpop.eup %1097 }
 0x21b   : > { %v927_v14 = vmul.f32 %v1098_v12, %v925_v10  ;;  %vm932_vm0 = vweird.f32 %v1098_v12 }
 0x21c   : > { %vm933_vm5 = vmor %vm931_vm4, %vm932_vm0 }
 0x21d   : > { %v928_v16 = vsub.f32 1.0, %v927_v14 }
 0x21f   : > { %v929_v17 = vmul.f32 %v1098_v12, %v928_v16 }
 0x221   : > { %v930_v20 = vadd.f32 %v1098_v12, %v929_v17 }
 0x223   : > { %v934_v22 = vsel %vm933_vm5, %v1098_v12, %v930_v20 }
 0x224   : > { %v939_v23 = vsel %vm936_vm6, %v938_v21, %v934_v22 }
 0x225   : > { %v945_v36 = vperm.slane %v939_v23, 2  ;;  %v944_v25 = vperm.slane %v939_v23, 1  ;;  %v943_v0 = vperm.slane %v939_v23, 0 }
 0x227   : > { %951 = vrot.lane.b32.xlu1 %v945_v36, %s1126_s15  ;;  %v946_v26 = vrot.slane %v944_v25, 4 }
 0x229   : > { %v948_v27 = vsel %vm947_vm7, %v943_v0, %v946_v26 }
 0x22a   : > { %949 = vrot.lane.b32.xlu0 %v948_v27, %s1126_s15 }
 0x299   : > { %v952_v31 = vpop.permute.xlu1 %951 }
 0x29a   : > { %v954_v39 = vrot.slane %v952_v31, 4 }
 0x29c   : > { %v950_v11 = vpop.permute.xlu0 %949 }
 0x29d   : > { %v953_v32 = vrot.slane %v950_v11, 4 }
 0x29f   : > { %v955_v33 = vsel %vm947_vm7, %v953_v32, %v954_v39 }
 0x2a0   : > { %v957_v34 = vsel %vm956_vm8, %v950_v11, %v955_v33 }
 0x2a1   : > { %v959_v5 = vmul.f32 %v957_v34, %v1168_v2 }
 0x2a3   : > { %960 = vst [vmem:[%s170_s19] sm:$0xff] %v959_v5 }
 0x2a4 PF: > { %s13_s12 = sadd.s32 1, %s1105_s12  }
 0x2a5   : > { %p10_p4 = scmp.ge.s32.totalorder %s13_s12, 4  }
 0x2a7   :  { %12 = sbr.rel (!%p10_p4) target bundleno = 1 (0x1), region = 115 }

</bundles_post_ra>
